<compile_context>
chip_gen: v7x
topology: tpu7x:2x2x1
jax: 0.10.0
libtpu: 0.0.40
codegen_flags: <defaults>
</compile_context>

<pallas_src>
import functools

import jax
import jax.numpy as jnp
from jax.experimental import pallas as pl
from jax.experimental.pallas import tpu as pltpu

_MIB = 1024 * 1024


def _round_up(x, m):
    return ((x + m - 1) // m) * m


def _physical_vmem_bytes():
    try:
        return int(pltpu.get_tpu_info().vmem_capacity_bytes)
    except Exception:
        return 64 * _MIB  # conservative default: v7x per-TensorCore VMEM


# Per-core VMEM budget: leave headroom for Mosaic internal scratch; never ask
# for more than ~112 MiB even on 128-MiB parts (v5e/v6e).
_VMEM_BUDGET = min(max(_physical_vmem_bytes() - 12 * _MIB, 32 * _MIB), 112 * _MIB)


def _gelu_new(x):
    # GPT-2 "new" gelu: 0.5*x*(1 + tanh(sqrt(2/pi)*(x + 0.044715*x^3)))
    c = jnp.sqrt(2.0 / jnp.pi).astype(x.dtype)
    return 0.5 * x * (1.0 + jnp.tanh(c * (x + 0.044715 * x * x * x)))


# ----------------------------------------------------------------------------
# Kernel bodies
# ----------------------------------------------------------------------------
def mlp_kernel_resident(x_ref, w_in_ref, b_in_ref, w_out_ref, b_out_ref, o_ref):
    """One row-tile; full hidden dim resident in VMEM (weights DMA'd once)."""
    x = x_ref[...]                                            # (tm, Dp)
    pre = jnp.dot(x, w_in_ref[...],
                  preferred_element_type=jnp.float32)         # (tm, Hp) f32
    pre = pre + b_in_ref[...]
    post = _gelu_new(pre)
    out = jnp.dot(post.astype(w_out_ref.dtype), w_out_ref[...],
                  preferred_element_type=jnp.float32)         # (tm, Dp) f32
    o_ref[...] = (out + b_out_ref[...]).astype(o_ref.dtype)


def mlp_kernel_streaming(x_ref, w_in_ref, b_in_ref, w_out_ref, b_out_ref,
                         o_ref, acc_ref):
    """(row-tile i, hidden-tile k) grid step with an f32 VMEM accumulator."""
    k = pl.program_id(1)

    @pl.when(k == 0)
    def _():
        acc_ref[...] = jnp.zeros_like(acc_ref)

    x = x_ref[...]                                            # (tm, Dp)
    pre = jnp.dot(x, w_in_ref[...],
                  preferred_element_type=jnp.float32)         # (tm, tk) f32
    pre = pre + b_in_ref[...]
    post = _gelu_new(pre)
    acc_ref[...] += jnp.dot(post.astype(w_out_ref.dtype), w_out_ref[...],
                            preferred_element_type=jnp.float32)

    @pl.when(k == pl.num_programs(1) - 1)
    def _():
        o_ref[...] = (acc_ref[...] + b_out_ref[...]).astype(o_ref.dtype)


# ----------------------------------------------------------------------------
# One-time weight formatting (hoisted out of the per-token-call path)
# ----------------------------------------------------------------------------
def prepare_mlp_params(w_in, b_in, w_out, b_out, *, compute_dtype=jnp.bfloat16):
    """Pad weights to lane-dense (multiples of 128) shapes and cast once.

    Call this once per weight set; the result can be reused across calls so
    the padded/cast copies are never re-materialized in HBM per forward pass.
    """
    d_model, d_mlp = w_in.shape
    Dp = _round_up(d_model, 128)
    Hp = _round_up(d_mlp, 128)
    w_in_p = jnp.pad(w_in, ((0, Dp - d_model), (0, Hp - d_mlp))).astype(compute_dtype)
    w_out_p = jnp.pad(w_out, ((0, Hp - d_mlp), (0, Dp - d_model))).astype(compute_dtype)
    b_in_p = jnp.pad(b_in.astype(jnp.float32), (0, Hp - d_mlp)).reshape(1, Hp)
    b_out_p = jnp.pad(b_out.astype(jnp.float32), (0, Dp - d_model)).reshape(1, Dp)
    return {"w_in": w_in_p, "b_in": b_in_p, "w_out": w_out_p, "b_out": b_out_p}


# ----------------------------------------------------------------------------
# Forward
# ----------------------------------------------------------------------------
@functools.partial(jax.jit, static_argnames=("tm", "tk", "force_streaming"))
def mlp_forward(x, params, *, tm=512, tk=1024, force_streaming=False):
    """x: [batch, posn, d_model]; params from prepare_mlp_params()."""
    batch, posn, d_model = x.shape
    w_in_p, b_in_p = params["w_in"], params["b_in"]
    w_out_p, b_out_p = params["w_out"], params["b_out"]
    Dp, Hp = w_in_p.shape
    wbytes = jnp.dtype(w_in_p.dtype).itemsize

    M = batch * posn
    tm_eff = _round_up(min(tm, _round_up(M, 8)), 8)
    budget = _VMEM_BUDGET

    def footprint(tm_blk, tk_blk, with_acc):
        f = 2 * 2 * Dp * tk_blk * wbytes        # W_in + W_out chunks, 2 buffers
        f += 2 * tm_blk * Dp * wbytes           # x tile, 2 buffers
        f += 2 * tm_blk * Dp * 4                # f32 out tile, 2 buffers
        f += 2 * (Hp + Dp) * 4                  # biases (tiny)
        if with_acc:
            f += tm_blk * Dp * 4                # f32 accumulator scratch
        return f

    resident = (not force_streaming) and footprint(tm_eff, Hp, False) <= budget

    if not resident:
        # If even the smallest hidden tile overflows the budget (huge d_model /
        # tm), shrink the row tile.
        while tm_eff > 8 and footprint(tm_eff, 128, True) > budget:
            tm_eff = _round_up(max(8, tm_eff // 2), 8)
        # Largest hidden tile <= tk that divides Hp and fits the budget.
        cand0 = min(_round_up(max(128, min(tk, Hp)), 128), Hp)
        tk_eff = 128
        for cand in range(cand0, 127, -128):
            if Hp % cand == 0 and footprint(tm_eff, cand, True) <= budget:
                tk_eff = cand
                break
    else:
        tk_eff = Hp

    Mp = _round_up(M, tm_eff)

    # Pad activations (cheap, per-call; weights were formatted once already).
    # Zero padding is exact: padded rows are sliced off and padded d_model /
    # d_mlp columns contribute 0 to every dot product (gelu_new(0) == 0).
    x2 = jnp.pad(x.reshape(M, d_model),
                 ((0, Mp - M), (0, Dp - d_model))).astype(w_in_p.dtype)

    compiler_kwargs = dict(vmem_limit_bytes=budget)

    if resident:
        out2 = pl.pallas_call(
            mlp_kernel_resident,
            out_shape=jax.ShapeDtypeStruct((Mp, Dp), jnp.float32),
            grid_spec=pltpu.PrefetchScalarGridSpec(
                num_scalar_prefetch=0,
                grid=(Mp // tm_eff,),
                in_specs=[
                    pl.BlockSpec((tm_eff, Dp), lambda i: (i, 0)),
                    pl.BlockSpec((Dp, Hp), lambda i: (0, 0)),   # W_in (resident)
                    pl.BlockSpec((1, Hp), lambda i: (0, 0)),    # b_in
                    pl.BlockSpec((Hp, Dp), lambda i: (0, 0)),   # W_out (resident)
                    pl.BlockSpec((1, Dp), lambda i: (0, 0)),    # b_out
                ],
                out_specs=pl.BlockSpec((tm_eff, Dp), lambda i: (i, 0)),
            ),
            compiler_params=pltpu.CompilerParams(
                dimension_semantics=("parallel",), **compiler_kwargs),
        )(x2, w_in_p, b_in_p, w_out_p, b_out_p)
    else:
        out2 = pl.pallas_call(
            mlp_kernel_streaming,
            out_shape=jax.ShapeDtypeStruct((Mp, Dp), jnp.float32),
            grid_spec=pltpu.PrefetchScalarGridSpec(
                num_scalar_prefetch=0,
                grid=(Mp // tm_eff, Hp // tk_eff),
                in_specs=[
                    # x rows: block index constant along k -> fetched once per i.
                    pl.BlockSpec((tm_eff, Dp), lambda i, k: (i, 0)),
                    pl.BlockSpec((Dp, tk_eff), lambda i, k: (0, k)),  # W_in chunk
                    pl.BlockSpec((1, tk_eff), lambda i, k: (0, k)),   # b_in chunk
                    pl.BlockSpec((tk_eff, Dp), lambda i, k: (k, 0)),  # W_out chunk
                    pl.BlockSpec((1, Dp), lambda i, k: (0, 0)),       # b_out
                ],
                out_specs=pl.BlockSpec((tm_eff, Dp), lambda i, k: (i, 0)),
                scratch_shapes=[pltpu.VMEM((tm_eff, Dp), jnp.float32)],
            ),
            compiler_params=pltpu.CompilerParams(
                dimension_semantics=("parallel", "arbitrary"), **compiler_kwargs),
        )(x2, w_in_p, b_in_p, w_out_p, b_out_p)

    return out2[:M, :d_model].reshape(batch, posn, d_model).astype(x.dtype)


def mlp_reference(x, w_in, b_in, w_out, b_out):
    hi = jax.lax.Precision.HIGHEST
    pre = jnp.einsum("bpd,dm->bpm", x, w_in, precision=hi) + b_in
    post = _gelu_new(pre)
    return jnp.einsum("bpm,md->bpd", post, w_out, precision=hi) + b_out


if __name__ == "__main__":
    key = jax.random.PRNGKey(0)

    def make_case(k, batch, posn, d_model, d_mlp, init_range=0.02):
        kx, kwi, kwo = jax.random.split(k, 3)
        x = jax.random.normal(kx, (batch, posn, d_model), dtype=jnp.float32)
        w_in = init_range * jax.random.normal(kwi, (d_model, d_mlp), jnp.float32)
        w_out = init_range * jax.random.normal(kwo, (d_mlp, d_model), jnp.float32)
        b_in = jnp.zeros((d_mlp,), jnp.float32)
        b_out = jnp.zeros((d_model,), jnp.float32)
        return x, w_in, b_in, w_out, b_out

    k1, k2 = jax.random.split(key)

    # Case 1: toy config (d_mlp = 4 * d_model). Strict check of the resident
    # single-pass kernel with f32 compute.
    x1, w_in1, b_in1, w_out1, b_out1 = make_case(k1, batch=2, posn=8,
                                                 d_model=32, d_mlp=128)
    ref1 = mlp_reference(x1, w_in1, b_in1, w_out1, b_out1)

    p1_f32 = prepare_mlp_params(w_in1, b_in1, w_out1, b_out1,
                                compute_dtype=jnp.float32)
    out1 = jax.block_until_ready(mlp_forward(x1, p1_f32))
    assert out1.shape == x1.shape
    assert jnp.allclose(out1, ref1, atol=1e-4, rtol=1e-4), \
        float(jnp.max(jnp.abs(out1 - ref1)))

    # Case 1b: default bf16 MXU operand path (f32 accumulation / f32 writeback);
    # looser tolerance for bf16 operand rounding.
    p1_bf16 = prepare_mlp_params(w_in1, b_in1, w_out1, b_out1)
    out1b = jax.block_until_ready(mlp_forward(x1, p1_bf16))
    assert float(jnp.max(jnp.abs(out1b - ref1))) < 5e-3

    # Case 2: force the weight-streaming (k-tiled) path so the f32 accumulator
    # init/accumulate/finalize logic is exercised with grid (4, 4).
    x2, w_in2, b_in2, w_out2, b_out2 = make_case(k2, batch=2, posn=128,
                                                 d_model=256, d_mlp=1024)
    p2 = prepare_mlp_params(w_in2, b_in2, w_out2, b_out2,
                            compute_dtype=jnp.float32)
    out2 = jax.block_until_ready(
        mlp_forward(x2, p2, tm=64, tk=256, force_streaming=True))
    ref2 = mlp_reference(x2, w_in2, b_in2, w_out2, b_out2)
    assert jnp.allclose(out2, ref2, atol=1e-4, rtol=1e-4), \
        float(jnp.max(jnp.abs(out2 - ref2)))

    print("KERNEL_OK")
</pallas_src>

<mosaic_0001>
module attributes {stable_mosaic.version = 11 : i64} {
  func.func @mlp_kernel_resident(%arg0: i32, %arg1: memref<16x128xf32, #tpu.memory_space<vmem>>, %arg2: memref<128x128xf32, #tpu.memory_space<vmem>>, %arg3: memref<1x128xf32, #tpu.memory_space<vmem>>, %arg4: memref<128x128xf32, #tpu.memory_space<vmem>>, %arg5: memref<1x128xf32, #tpu.memory_space<vmem>>, %arg6: memref<16x128xf32, #tpu.memory_space<vmem>>) attributes {dimension_semantics = [#tpu.dimension_semantics<parallel>], iteration_bounds = array<i64: 1>, scalar_prefetch = 0 : i64, scratch_operands = 0 : i64, tpu.core_type = #tpu.core_type<tc>, window_params = [{transform_indices = @transform_0, window_bounds = array<i64: 16, 128>}, {pipeline_mode = #tpu.pipeline_mode<synchronous>, transform_indices = @transform_1, window_bounds = array<i64: 128, 128>}, {pipeline_mode = #tpu.pipeline_mode<synchronous>, transform_indices = @transform_2, window_bounds = array<i64: 1, 128>}, {pipeline_mode = #tpu.pipeline_mode<synchronous>, transform_indices = @transform_3, window_bounds = array<i64: 128, 128>}, {pipeline_mode = #tpu.pipeline_mode<synchronous>, transform_indices = @transform_4, window_bounds = array<i64: 1, 128>}, {transform_indices = @transform_5, window_bounds = array<i64: 16, 128>}]} {
    %c0 = arith.constant 0 : index
    %c0_0 = arith.constant 0 : index
    %0 = vector.load %arg1[%c0, %c0_0] : memref<16x128xf32, #tpu.memory_space<vmem>>, vector<16x128xf32>
    %c0_1 = arith.constant 0 : index
    %c0_2 = arith.constant 0 : index
    %1 = vector.load %arg2[%c0_1, %c0_2] : memref<128x128xf32, #tpu.memory_space<vmem>>, vector<128x128xf32>
    %cst = arith.constant dense<0.000000e+00> : vector<16x128xf32>
    %2 = tpu.matmul %0, %1, %cst {dimension_numbers = #tpu.dot_dimension_numbers<[1], [0], [0], [1], [0, 0, 1, 1], [], []>} : vector<16x128xf32>, vector<128x128xf32>, vector<16x128xf32> -> vector<16x128xf32>
    %c0_3 = arith.constant 0 : index
    %c0_4 = arith.constant 0 : index
    %3 = vector.load %arg3[%c0_3, %c0_4] : memref<1x128xf32, #tpu.memory_space<vmem>>, vector<1x128xf32>
    %4 = vector.broadcast %3 : vector<1x128xf32> to vector<16x128xf32>
    %5 = arith.addf %2, %4 : vector<16x128xf32>
    %cst_5 = arith.constant 0.636619746 : f32
    %6 = math.sqrt %cst_5 : f32
    %cst_6 = arith.constant 5.000000e-01 : f32
    %7 = vector.broadcast %cst_6 : f32 to vector<16x128xf32>
    %8 = arith.mulf %7, %5 : vector<16x128xf32>
    %cst_7 = arith.constant 4.471500e-02 : f32
    %9 = vector.broadcast %cst_7 : f32 to vector<16x128xf32>
    %10 = arith.mulf %9, %5 : vector<16x128xf32>
    %11 = arith.mulf %10, %5 : vector<16x128xf32>
    %12 = arith.mulf %11, %5 : vector<16x128xf32>
    %13 = arith.addf %5, %12 : vector<16x128xf32>
    %14 = vector.broadcast %6 : f32 to vector<16x128xf32>
    %15 = arith.mulf %14, %13 : vector<16x128xf32>
    %16 = math.tanh %15 : vector<16x128xf32>
    %cst_8 = arith.constant 1.000000e+00 : f32
    %17 = vector.broadcast %cst_8 : f32 to vector<16x128xf32>
    %18 = arith.addf %17, %16 : vector<16x128xf32>
    %19 = arith.mulf %8, %18 : vector<16x128xf32>
    %c0_9 = arith.constant 0 : index
    %c0_10 = arith.constant 0 : index
    %20 = vector.load %arg4[%c0_9, %c0_10] : memref<128x128xf32, #tpu.memory_space<vmem>>, vector<128x128xf32>
    %cst_11 = arith.constant dense<0.000000e+00> : vector<16x128xf32>
    %21 = tpu.matmul %19, %20, %cst_11 {dimension_numbers = #tpu.dot_dimension_numbers<[1], [0], [0], [1], [0, 0, 1, 1], [], []>} : vector<16x128xf32>, vector<128x128xf32>, vector<16x128xf32> -> vector<16x128xf32>
    %c0_12 = arith.constant 0 : index
    %c0_13 = arith.constant 0 : index
    %22 = vector.load %arg5[%c0_12, %c0_13] : memref<1x128xf32, #tpu.memory_space<vmem>>, vector<1x128xf32>
    %23 = vector.broadcast %22 : vector<1x128xf32> to vector<16x128xf32>
    %24 = arith.addf %21, %23 : vector<16x128xf32>
    %c0_14 = arith.constant 0 : index
    %c0_15 = arith.constant 0 : index
    %25 = vector.load %arg6[%c0_14, %c0_15] : memref<16x128xf32, #tpu.memory_space<vmem>>, vector<16x128xf32>
    tpu.vector_store %arg6[%c0_14, %c0_15], %24 {strides = array<i32>} : memref<16x128xf32, #tpu.memory_space<vmem>>, vector<16x128xf32>,
    return
  }
  func.func @transform_0(%arg0: i32) -> (i32, i32) {
    %c0_i32 = arith.constant 0 : i32
    %c0_i32_0 = arith.constant 0 : i32
    return %arg0, %c0_i32 : i32, i32
  }
  func.func @transform_1(%arg0: i32) -> (i32, i32) {
    %c0_i32 = arith.constant 0 : i32
    %c0_i32_0 = arith.constant 0 : i32
    %c0_i32_1 = arith.constant 0 : i32
    return %c0_i32, %c0_i32_0 : i32, i32
  }
  func.func @transform_2(%arg0: i32) -> (i32, i32) {
    %c0_i32 = arith.constant 0 : i32
    %c0_i32_0 = arith.constant 0 : i32
    %c0_i32_1 = arith.constant 0 : i32
    return %c0_i32, %c0_i32_0 : i32, i32
  }
  func.func @transform_3(%arg0: i32) -> (i32, i32) {
    %c0_i32 = arith.constant 0 : i32
    %c0_i32_0 = arith.constant 0 : i32
    %c0_i32_1 = arith.constant 0 : i32
    return %c0_i32, %c0_i32_0 : i32, i32
  }
  func.func @transform_4(%arg0: i32) -> (i32, i32) {
    %c0_i32 = arith.constant 0 : i32
    %c0_i32_0 = arith.constant 0 : i32
    %c0_i32_1 = arith.constant 0 : i32
    return %c0_i32, %c0_i32_0 : i32, i32
  }
  func.func @transform_5(%arg0: i32) -> (i32, i32) {
    %c0_i32 = arith.constant 0 : i32
    %c0_i32_0 = arith.constant 0 : i32
    return %arg0, %c0_i32 : i32, i32
  }
}

</mosaic_0001>

<bundles_post_ra>
// kernel: mlp_forward.1
= control target key start
LH: loop header
LB: loop body
LE: loop exit
PB: predicated region body
PF: predicated region fallthrough
CT: control target
= control target key end

     0   :  { %10 = vsyncpa [#allocation3], 0  ;;  %s576_s0 = inlined_call_operand.vmem [shape: f32[16,128], index: 0, kind: input, shape index: {}]   ;;  %s577_s1 = inlined_call_operand.hbm [shape: f32[128,128], index: 1, kind: input, shape index: {}]   ;;  %s578_s2 = inlined_call_operand.vmem [shape: f32[1,128], index: 2, kind: input, shape index: {}]   ;;  %s579_s3 = inlined_call_operand.hbm [shape: f32[128,128], index: 3, kind: input, shape index: {}]   ;;  %s580_s4 = inlined_call_operand.vmem [shape: f32[1,128], index: 4, kind: input, shape index: {}]   ;;  %s581_s5 = inlined_call_operand.vmem [shape: f32[16,128], index: 5, kind: output, shape index: {}]  }
   0x1   :  { %11 = vsyncpa [#allocation5], 0  ;;  %s500_s18 = smov [#allocation2]   ;;  %s452_s22 = scalar_lea.hbm %s577_s1, 2048 }
   0x2   :  { %s19_s19 = sshll.u32 %s500_s18, 4  ;;  %p453_p0 = scmp.ne.s32.totalorder %s577_s1, %s452_s22  ;;  %s20_s19 = int_to_ptr.vmem [resolvable:$true] %s19_s19 }
   0x3   :  { %p456_p1 = scmp.lt.u32.totalorder %s452_s22, %s577_s1 }
   0x5   :  { %p458_p2 = pnand %p456_p1, %p453_p0 }
   0x7   :  { %461 = shalt.err (!%p458_p2)
}
   0x8   :  { %s462_s27 = scalar_lea.vmem %s20_s19, 2048  ;;  %p467_p4 = scmp.lt.s32.totalorder %s20_s19, %s20_s19 }
   0x9   :  { %p463_p3 = scmp.ne.s32.totalorder %s20_s19, %s462_s27  ;;  %p468_p5 = scmp.lt.s32.totalorder %s462_s27, %s462_s27 }
   0xb   :  { %p469_p6 = por %p468_p5, %p467_p4 }
   0xd   :  { %p470_p7 = pnand %p469_p6, %p463_p3 }
   0xf   :  { %473 = shalt.err (!%p470_p7)
}
  0x10   :  { %s501_s28 = smov 128   ;;  %s502_s29 = smov 8  }
  0x11   :  { %25 = dma.hbm_to_vmem [thread:$0]  %s577_s1, 2048, %s20_s19, [#allocation3], %s501_s28, %s501_s28, %s502_s29  }
  0x12   :  { %s503_s7 = smov [#allocation4]   ;;  %s474_s11 = scalar_lea.hbm %s579_s3, 2048 }
  0x13   :  { %s33_s8 = sshll.u32 %s503_s7, 4  ;;  %p475_p8 = scmp.ne.s32.totalorder %s579_s3, %s474_s11  ;;  %s34_s8 = int_to_ptr.vmem [resolvable:$true] %s33_s8 }
  0x14   :  { %p478_p9 = scmp.lt.u32.totalorder %s474_s11, %s579_s3 }
  0x16   :  { %p480_p10 = pnand %p478_p9, %p475_p8 }
  0x18   :  { %483 = shalt.err (!%p480_p10)
}
  0x19   :  { %s484_s16 = scalar_lea.vmem %s34_s8, 2048  ;;  %p489_p12 = scmp.lt.s32.totalorder %s34_s8, %s34_s8 }
  0x1a   :  { %p485_p11 = scmp.ne.s32.totalorder %s34_s8, %s484_s16  ;;  %p490_p13 = scmp.lt.s32.totalorder %s484_s16, %s484_s16 }
  0x1c   :  { %p491_p0 = por %p490_p13, %p489_p12 }
  0x1e   :  { %p492_p1 = pnand %p491_p0, %p485_p11 }
  0x20   :  { %495 = shalt.err (!%p492_p1)
}
  0x21   :  { %39 = dma.hbm_to_vmem [thread:$0]  %s579_s3, 2048, %s34_s8, [#allocation5], %s501_s28, %s501_s28, %s502_s29  }
  0x22   :  { %496 = dma.done.wait [#allocation3], 2048  }
  0x23   :  { %497 = vsyncadd [#allocation3], 4294965248 }
  0x24   :  { %498 = dma.done.wait [#allocation5], 2048  }
  0x25   :  { %499 = vsyncadd [#allocation5], 4294965248  ;;  %v50_v0 = vld [vmem:[#allocation2] sm:$0xff]  ;;  %v51_v1 = vld [vmem:[#allocation2 + $0x8] sm:$0xff] }
  0x26   :  { %v52_v2 = vld [vmem:[#allocation2 + $0x10] sm:$0xff]  ;;  %v380_v3 = vpack.c.bf16 %v51_v1, %v50_v0  ;;  %v53_v4 = vld [vmem:[#allocation2 + $0x18] sm:$0xff]  ;;  %v54_v6 = vld [vmem:[#allocation2 + $0x20] sm:$0xff] }
  0x27   :  { %v384_v5 = vpack.c.bf16 %v53_v4, %v52_v2  ;;  %v55_v7 = vld [vmem:[#allocation2 + $0x28] sm:$0xff]  ;;  %v56_v9 = vld [vmem:[#allocation2 + $0x30] sm:$0xff]  ;;  %v48_v10 = vld [vmem:[%s576_s0] sm:$0xff] }
  0x28   :  { %381 = vmatprep.subr.bf16.mxu0 %v380_v3  ;;  %v388_v8 = vpack.c.bf16 %v55_v7, %v54_v6  ;;  %v57_v11 = vld [vmem:[#allocation2 + $0x38] sm:$0xff]  ;;  %342 = vmatprep.mubr.f32.mxu0 %v48_v10  ;;  %v166_v12 = vld [vmem:[#allocation4] sm:$0xff]  ;;  %v167_v13 = vld [vmem:[#allocation4 + $0x8] sm:$0xff] }
  0x29   :  { %383 = vmatpush3.bf16.msra.mxu0 %v380_v3  ;;  %v412_v14 = vpack.c.bf16 %v167_v13, %v166_v12  ;;  %v392_v15 = vpack.c.bf16 %v57_v11, %v56_v9  ;;  %v58_v16 = vld [vmem:[#allocation2 + $0x40] sm:$0xff]  ;;  %v59_v17 = vld [vmem:[#allocation2 + $0x48] sm:$0xff]  ;;  %v60_v19 = vld [vmem:[#allocation2 + $0x50] sm:$0xff] }
  0x2a   :  { %385 = vmatprep.subr.bf16.mxu0 %v384_v5  ;;  %v396_v18 = vpack.c.bf16 %v59_v17, %v58_v16  ;;  %v61_v20 = vld [vmem:[#allocation2 + $0x58] sm:$0xff]  ;;  %v62_v22 = vld [vmem:[#allocation2 + $0x60] sm:$0xff]  ;;  %v63_v23 = vld [vmem:[#allocation2 + $0x68] sm:$0xff] }
  0x2b   :  { %413 = vmatprep.subr.bf16.mxu1 %v412_v14  ;;  %v400_v21 = vpack.c.bf16 %v61_v20, %v60_v19  ;;  %v404_v24 = vpack.c.bf16 %v63_v23, %v62_v22  ;;  %v64_v25 = vld [vmem:[#allocation2 + $0x70] sm:$0xff]  ;;  %v65_v26 = vld [vmem:[#allocation2 + $0x78] sm:$0xff]  ;;  %v49_v28 = vld [vmem:[%s576_s0 + $0x8] sm:$0xff] }
  0x2c   :  { %415 = vmatpush3.bf16.msra.mxu1 %v412_v14  ;;  %v408_v27 = vpack.c.bf16 %v65_v26, %v64_v25  ;;  %v168_v29 = vld [vmem:[#allocation4 + $0x10] sm:$0xff]  ;;  %v169_v30 = vld [vmem:[#allocation4 + $0x18] sm:$0xff]  ;;  %v170_v32 = vld [vmem:[#allocation4 + $0x20] sm:$0xff] }
  0x2d   :  { %387 = vmatpush3.bf16.msra.mxu0 %v384_v5  ;;  %v416_v31 = vpack.c.bf16 %v169_v30, %v168_v29  ;;  %v171_v33 = vld [vmem:[#allocation4 + $0x28] sm:$0xff]  ;;  %v172_v35 = vld [vmem:[#allocation4 + $0x30] sm:$0xff]  ;;  %v173_v36 = vld [vmem:[#allocation4 + $0x38] sm:$0xff] }
  0x2e   :  { %389 = vmatprep.subr.bf16.mxu0 %v388_v8  ;;  %v420_v34 = vpack.c.bf16 %v171_v33, %v170_v32  ;;  %v174_v37 = vld [vmem:[#allocation4 + $0x40] sm:$0xff]  ;;  %v424_v38 = vpack.c.bf16 %v173_v36, %v172_v35  ;;  %v175_v39 = vld [vmem:[#allocation4 + $0x48] sm:$0xff]  ;;  %v176_v41 = vld [vmem:[#allocation4 + $0x50] sm:$0xff] }
  0x2f   :  { %417 = vmatprep.subr.bf16.mxu1 %v416_v31  ;;  %v428_v40 = vpack.c.bf16 %v175_v39, %v174_v37  ;;  %v177_v42 = vld [vmem:[#allocation4 + $0x58] sm:$0xff]  ;;  %v178_v44 = vld [vmem:[#allocation4 + $0x60] sm:$0xff]  ;;  %v179_v45 = vld [vmem:[#allocation4 + $0x68] sm:$0xff] }
  0x30   :  { %419 = vmatpush3.bf16.msra.mxu1 %v416_v31  ;;  %v432_v43 = vpack.c.bf16 %v177_v42, %v176_v41  ;;  %v436_v46 = vpack.c.bf16 %v179_v45, %v178_v44  ;;  %v180_v47 = vld [vmem:[#allocation4 + $0x70] sm:$0xff]  ;;  %v181_v48 = vld [vmem:[#allocation4 + $0x78] sm:$0xff]  ;;  %v272_v50 = vld [vmem:[%s578_s2] ss:$0 sm:$0xff] }
  0x31   :  { %391 = vmatpush3.bf16.msra.mxu0 %v388_v8  ;;  %421 = vmatprep.subr.bf16.mxu1 %v420_v34  ;;  %v440_v49 = vpack.c.bf16 %v181_v48, %v180_v47  ;;  %v273_v9 = vld [vmem:[%s580_s4] ss:$0 sm:$0xff] }
  0x32   :  { %393 = vmatprep.subr.bf16.mxu0 %v392_v15 }
  0x34   :  { %423 = vmatpush3.bf16.msra.mxu1 %v420_v34 }
  0x35   :  { %395 = vmatpush3.bf16.msra.mxu0 %v392_v15  ;;  %425 = vmatprep.subr.bf16.mxu1 %v424_v38 }
  0x36   :  { %397 = vmatprep.subr.bf16.mxu0 %v396_v18 }
  0x38   :  { %427 = vmatpush3.bf16.msra.mxu1 %v424_v38 }
  0x39   :  { %399 = vmatpush3.bf16.msra.mxu0 %v396_v18  ;;  %429 = vmatprep.subr.bf16.mxu1 %v428_v40 }
  0x3a   :  { %401 = vmatprep.subr.bf16.mxu0 %v400_v21 }
  0x3c   :  { %431 = vmatpush3.bf16.msra.mxu1 %v428_v40 }
  0x3d   :  { %403 = vmatpush3.bf16.msra.mxu0 %v400_v21  ;;  %433 = vmatprep.subr.bf16.mxu1 %v432_v43 }
  0x3e   :  { %405 = vmatprep.subr.bf16.mxu0 %v404_v24 }
  0x40   :  { %435 = vmatpush3.bf16.msra.mxu1 %v432_v43 }
  0x41   :  { %407 = vmatpush3.bf16.msra.mxu0 %v404_v24  ;;  %437 = vmatprep.subr.bf16.mxu1 %v436_v46 }
  0x42   :  { %409 = vmatprep.subr.bf16.mxu0 %v408_v27 }
  0x44   :  { %439 = vmatpush3.bf16.msra.mxu1 %v436_v46 }
  0x45   :  { %411 = vmatpush3.bf16.msra.mxu0 %v408_v27  ;;  %441 = vmatprep.subr.bf16.mxu1 %v440_v49 }
  0x48   :  { %343 = vmatmul.mubr.f32.vlgmr.msra.gmra.mrb[0].mxu0 %v49_v28  ;;  %443 = vmatpush3.bf16.msra.mxu1 %v440_v49 }
 0x11b   :  { %v344_v51 = vpop.f32.mrb[0].mxu0 }
 0x11c   :  { %v145_v52 = vadd.f32 %v344_v51, %v272_v50  ;;  %v139_v53 = vpop.f32.mrb[1].mxu0 }
 0x11d   :  { %v140_v54 = vadd.f32 %v272_v50, %v139_v53 }
 0x11e   :  { %v151_v55 = vmul.f32 0.044715, %v145_v52  ;;  %v149_v6 = vmul.f32 0.5, %v145_v52 }
 0x11f   :  { %v150_v56 = vmul.f32 0.044715, %v140_v54  ;;  %v148_v4 = vmul.f32 0.5, %v140_v54 }
 0x120   :  { %v153_v57 = vmul.f32 %v151_v55, %v145_v52 }
 0x121   :  { %v152_v58 = vmul.f32 %v150_v56, %v140_v54 }
 0x122   :  { %v155_v59 = vmul.f32 %v153_v57, %v145_v52 }
 0x123   :  { %v154_v60 = vmul.f32 %v152_v58, %v140_v54 }
 0x124   :  { %v157_v61 = vadd.f32 %v155_v59, %v145_v52 }
 0x125   :  { %v156_v62 = vadd.f32 %v154_v60, %v140_v54 }
 0x126   :  { %v159_v63 = vmul.f32 0.7978845, %v157_v61 }
 0x127   :  { %v158_v0 = vmul.f32 0.7978845, %v156_v62 }
 0x128   :  { %448 = vtanh.f32 %v159_v63 }
 0x129   :  { %450 = vtanh.f32 %v158_v0 }
 0x132   :  { %v449_v1 = vpop.eup %448 }
 0x133   :  { %v451_v2 = vpop.eup %450  ;;  %v163_v3 = vadd.f32 1.0, %v449_v1 }
 0x134   :  { %v162_v5 = vadd.f32 1.0, %v451_v2 }
 0x135   :  { %v165_v8 = vmul.f32 %v163_v3, %v149_v6 }
 0x136   :  { %v164_v7 = vmul.f32 %v162_v5, %v148_v4 }
 0x138   :  { %377 = vmatprep.mubr.f32.mxu1 %v164_v7 }
 0x139   :  { %378 = vmatmul.mubr.f32.vlgmr.msra.gmra.mrb[0].mxu1 %v165_v8 }
 0x20c   :  { %v379_v10 = vpop.f32.mrb[0].mxu1 }
 0x20d   :  { %v261_v11 = vadd.f32 %v379_v10, %v273_v9  ;;  %v255_v12 = vpop.f32.mrb[1].mxu1 }
 0x20e   :  { %v256_v13 = vadd.f32 %v273_v9, %v255_v12 }
 0x20f   :  { %265 = vst [vmem:[%s581_s5 + $0x8] sm:$0xff] %v261_v11 }
 0x210   :  { %264 = vst [vmem:[%s581_s5] sm:$0xff] %v256_v13 }
 0x211   :  { %270 = vsyncpa [#allocation3], 1 }
 0x212   :  { %271 = vsyncpa [#allocation5], 1 }

</bundles_post_ra>
